<compile_context>
chip_gen: v5e
topology: v5e:2x2
jax: 0.10.0
libtpu: 0.0.40
codegen_flags: <defaults>
</compile_context>

<pallas_src>
import functools
import math

import jax
import jax.numpy as jnp
from jax.experimental import pallas as pl
from jax.experimental.pallas import tpu as pltpu


def _residual_cat_kernel(wt_ref, b_ref, x_ref, o_ref, *, c_blk):
    # wt_ref: (C_out, C_in)  fused [block; shortcut] weights, transposed
    # b_ref:  (C_out, 1)     fused bias
    # x_ref:  (C_in, T)      T spatial positions (lane axis), channels on sublanes
    # o_ref:  (C_out, T)     NCHW-compatible output tile (lane axis = spatial)
    x = x_ref[...]
    # Single fused matmul for both branches; f32 accumulation on the MXU.
    y = jnp.dot(wt_ref[...], x, preferred_element_type=jnp.float32)  # (C_out, T)
    y = y + b_ref[...]                                               # bias broadcast over lanes
    # ReLU only on the block-branch rows (first c_blk output channels).
    row = jax.lax.broadcasted_iota(jnp.int32, y.shape, 0)
    y = jnp.where(row < c_blk, jnp.maximum(y, 0.0), y)
    o_ref[...] = y.astype(o_ref.dtype)


def residual_cat(x_nchw, wb, bb, ws, bs, *, tile_hw=512):
    """x_nchw: (N, C_in, H, W) float32. Returns (N, C_blk + C_sc, H, W) in NCHW."""
    N, C_in, H, W = x_nchw.shape
    C_blk = wb.shape[1]
    C_sc = ws.shape[1]
    C_out = C_blk + C_sc
    HW = H * W

    # Fuse the two branches: one weight matrix, one bias vector.
    # Rows [0:C_blk] of wt correspond to the block branch, [C_blk:] to the shortcut.
    wt = jnp.transpose(jnp.concatenate([wb, ws], axis=1))            # (C_out, C_in)
    b = jnp.concatenate([bb.reshape(-1), bs.reshape(-1)]).reshape(C_out, 1)

    # NCHW -> (N, C_in, H*W): contiguous reshape, no data movement. Lane axis = spatial.
    x3 = x_nchw.reshape(N, C_in, HW)

    # Choose a lane-dense spatial tile (multiple of 128), clamped to the (padded) extent,
    # and keep at least 2 grid steps overall when possible (feeds both v7x TensorCores).
    tile = max(128, (tile_hw // 128) * 128)
    tile = min(tile, ((HW + 127) // 128) * 128)
    if N * math.ceil(HW / tile) < 2 and tile > 128:
        tile = max(128, ((tile // 2) // 128) * 128)
    n_hw = math.ceil(HW / tile)
    HW_pad = n_hw * tile
    if HW_pad != HW:
        x3 = jnp.pad(x3, ((0, 0), (0, 0), (0, HW_pad - HW)))

    kernel = functools.partial(_residual_cat_kernel, c_blk=C_blk)

    out3 = pl.pallas_call(
        kernel,
        out_shape=jax.ShapeDtypeStruct((N, C_out, HW_pad), x_nchw.dtype),
        grid_spec=pltpu.PrefetchScalarGridSpec(
            num_scalar_prefetch=0,
            grid=(N, n_hw),
            in_specs=[
                pl.BlockSpec((C_out, C_in), lambda n, t: (0, 0)),        # fused weights (resident)
                pl.BlockSpec((C_out, 1), lambda n, t: (0, 0)),           # fused bias (resident)
                pl.BlockSpec((None, C_in, tile), lambda n, t: (n, 0, t)),  # x tile
            ],
            out_specs=pl.BlockSpec((None, C_out, tile), lambda n, t: (n, 0, t)),
        ),
        compiler_params=pltpu.CompilerParams(
            dimension_semantics=("parallel", "parallel"),
        ),
    )(wt, b, x3)

    # Drop spatial padding (if any) and restore (N, C_out, H, W) — no transpose needed.
    return out3[:, :, :HW].reshape(N, C_out, H, W)


def _reference(x_nchw, wb, bb, ws, bs):
    # Pure-JAX reference matching the PyTorch module semantics.
    N, C_in, H, W = x_nchw.shape
    x2d = jnp.transpose(x_nchw, (0, 2, 3, 1)).reshape(-1, C_in)
    yb = jnp.maximum(x2d @ wb + bb, 0.0)
    ys = x2d @ ws + bs
    y = jnp.concatenate([yb, ys], axis=-1)
    return jnp.transpose(y.reshape(N, H, W, -1), (0, 3, 1, 2))


if __name__ == "__main__":
    key = jax.random.PRNGKey(0)
    k_x, k_wb, k_bb, k_ws, k_bs = jax.random.split(key, 5)

    N, C_in, H, W = 2, 4, 16, 16
    C_blk, C_sc = 4, 4  # output channels = 8

    x = jax.random.normal(k_x, (N, C_in, H, W), dtype=jnp.float32)

    # 1x1-conv weights stored as (C_in, C_out) per branch.
    wb = jax.random.normal(k_wb, (C_in, C_blk), dtype=jnp.float32) * 0.1
    bb = jax.random.normal(k_bb, (1, C_blk), dtype=jnp.float32) * 0.1
    ws = jax.random.normal(k_ws, (C_in, C_sc), dtype=jnp.float32) * 0.1
    bs = jax.random.normal(k_bs, (1, C_sc), dtype=jnp.float32) * 0.1

    y = residual_cat(x, wb, bb, ws, bs)
    jax.block_until_ready(y)

    y_ref = _reference(x, wb, bb, ws, bs)
    assert y.shape == (N, C_blk + C_sc, H, W), y.shape
    assert jnp.allclose(y, y_ref, atol=1e-5, rtol=1e-5)

    print("KERNEL_OK")
</pallas_src>

<mosaic_0001>
module attributes {stable_mosaic.version = 11 : i64} {
  func.func @_residual_cat_kernel(%arg0: i32, %arg1: i32, %arg2: memref<8x4xf32, #tpu.memory_space<vmem>>, %arg3: memref<8x1xf32, #tpu.memory_space<vmem>>, %arg4: memref<1x4x256xf32, #tpu.memory_space<vmem>>, %arg5: memref<1x8x256xf32, #tpu.memory_space<vmem>>) attributes {dimension_semantics = [#tpu.dimension_semantics<parallel>, #tpu.dimension_semantics<parallel>], iteration_bounds = array<i64: 2, 1>, scalar_prefetch = 0 : i64, scratch_operands = 0 : i64, tpu.core_type = #tpu.core_type<tc>, window_params = [{pipeline_mode = #tpu.pipeline_mode<synchronous>, transform_indices = @transform_0, window_bounds = array<i64: 8, 4>}, {pipeline_mode = #tpu.pipeline_mode<synchronous>, transform_indices = @transform_1, window_bounds = array<i64: 8, 1>}, {transform_indices = @transform_2, window_bounds = array<i64: 1, 4, 256>}, {transform_indices = @transform_3, window_bounds = array<i64: 1, 8, 256>}]} {
    %c0 = arith.constant 0 : index
    %c0_0 = arith.constant 0 : index
    %c0_1 = arith.constant 0 : index
    %0 = vector.load %arg4[%c0, %c0_0, %c0_1] : memref<1x4x256xf32, #tpu.memory_space<vmem>>, vector<1x4x256xf32>
    %1 = vector.shape_cast %0 : vector<1x4x256xf32> to vector<4x256xf32>
    %c0_2 = arith.constant 0 : index
    %c0_3 = arith.constant 0 : index
    %2 = vector.load %arg2[%c0_2, %c0_3] : memref<8x4xf32, #tpu.memory_space<vmem>>, vector<8x4xf32>
    %cst = arith.constant dense<0.000000e+00> : vector<8x256xf32>
    %3 = tpu.matmul %2, %1, %cst {dimension_numbers = #tpu.dot_dimension_numbers<[1], [0], [0], [1], [0, 0, 1, 1], [], []>} : vector<8x4xf32>, vector<4x256xf32>, vector<8x256xf32> -> vector<8x256xf32>
    %c0_4 = arith.constant 0 : index
    %c0_5 = arith.constant 0 : index
    %4 = vector.load %arg3[%c0_4, %c0_5] : memref<8x1xf32, #tpu.memory_space<vmem>>, vector<8x1xf32>
    %5 = vector.broadcast %4 : vector<8x1xf32> to vector<8x256xf32>
    %6 = arith.addf %3, %5 : vector<8x256xf32>
    %7 = tpu.iota {dimensions = array<i32: 0>} : vector<8x256xi32>
    %c4_i32 = arith.constant 4 : i32
    %8 = vector.broadcast %c4_i32 : i32 to vector<8x256xi32>
    %9 = arith.cmpi slt, %7, %8 : vector<8x256xi32>
    %cst_6 = arith.constant 0.000000e+00 : f32
    %10 = vector.broadcast %cst_6 : f32 to vector<8x256xf32>
    %11 = arith.maximumf %6, %10 : vector<8x256xf32>
    %12 = arith.select %9, %11, %6 : vector<8x256xi1>, vector<8x256xf32>
    %c0_7 = arith.constant 0 : index
    %c0_8 = arith.constant 0 : index
    %c0_9 = arith.constant 0 : index
    %13 = vector.load %arg5[%c0_7, %c0_8, %c0_9] : memref<1x8x256xf32, #tpu.memory_space<vmem>>, vector<1x8x256xf32>
    %14 = vector.shape_cast %13 : vector<1x8x256xf32> to vector<8x256xf32>
    %15 = vector.shape_cast %12 : vector<8x256xf32> to vector<1x8x256xf32>
    tpu.vector_store %arg5[%c0_7, %c0_8, %c0_9], %15 {strides = array<i32>} : memref<1x8x256xf32, #tpu.memory_space<vmem>>, vector<1x8x256xf32>,
    return
  }
  func.func @transform_0(%arg0: i32, %arg1: i32) -> (i32, i32) {
    %c0_i32 = arith.constant 0 : i32
    %c0_i32_0 = arith.constant 0 : i32
    %c0_i32_1 = arith.constant 0 : i32
    return %c0_i32, %c0_i32_0 : i32, i32
  }
  func.func @transform_1(%arg0: i32, %arg1: i32) -> (i32, i32) {
    %c0_i32 = arith.constant 0 : i32
    %c0_i32_0 = arith.constant 0 : i32
    %c0_i32_1 = arith.constant 0 : i32
    return %c0_i32, %c0_i32_0 : i32, i32
  }
  func.func @transform_2(%arg0: i32, %arg1: i32) -> (i32, i32, i32) {
    %c0_i32 = arith.constant 0 : i32
    %c0_i32_0 = arith.constant 0 : i32
    return %arg0, %c0_i32, %arg1 : i32, i32, i32
  }
  func.func @transform_3(%arg0: i32, %arg1: i32) -> (i32, i32, i32) {
    %c0_i32 = arith.constant 0 : i32
    %c0_i32_0 = arith.constant 0 : i32
    return %arg0, %c0_i32, %arg1 : i32, i32, i32
  }
}

</mosaic_0001>

<bundles_post_ra>
// kernel: tpu_custom_call.1
= control target key start
LH: loop header
LB: loop body
LE: loop exit
PB: predicated region body
PF: predicated region fallthrough
CT: control target
= control target key end

     0   :  { %8 = vsyncpa [#allocation3], 0  ;;  %s645_s0 = inlined_call_operand.vmem [shape: f32[8,4], index: 0, kind: input, shape index: {}]   ;;  %s646_s1 = inlined_call_operand.vmem [shape: f32[8,1], index: 1, kind: input, shape index: {}]   ;;  %s647_s2 = inlined_call_operand.vmem [shape: f32[2,4,256], index: 2, kind: input, shape index: {}]   ;;  %s648_s3 = inlined_call_operand.hbm [shape: f32[2,8,256], index: 3, kind: output, shape index: {}]  }
   0x1   :  { %10 = vsyncpa [#allocation3 + $0x1], 0  ;;  %s542_s12 = smov 0   ;;  %s544_s13 = smov 0  }
   0x2   :  { %s546_s14 = smov 0   ;;  %s548_s15 = smov 0  }
   0x3   :  { %s550_s16 = smov 0   ;;  %s552_s17 = smov 0  }
   0x4 LB: > { %s365_s18 = sadd.s32 4294967295, %s519_s17   ;;  %s366_s19 = sadd.s32 4294967294, %s519_s17   ;;  %s519_s17 = sphi %s552_s17, %s16_s17   ;;  %s515_s16 = sphi %s550_s16, %s655_s16   ;;  %s511_s15 = sphi %s548_s15, %s654_s15   ;;  %s507_s14 = sphi %s546_s14, %s653_s14   ;;  %s503_s13 = sphi %s544_s13, %s652_s13   ;;  %s499_s12 = sphi %s542_s12, %s651_s12  }
   0x5   : > { %s28_s20 = sadd.s32 1, %s515_s16  ;;  %s107_s21 = sadd.s32 1, %s507_s14 }
   0x6   : > { %p30_p0 = scmp.ge.s32.totalorder %s28_s20, 2  ;;  %p117_p1 = scmp.ne.s32.totalorder %s507_s14, %s503_s13 }
   0x7   : > { %p118_p2 = scmp.eq.s32.totalorder %s365_s18, 1  ;;  %p123_p3 = scmp.ne.s32.totalorder %s503_s13, %s499_s12 }
   0x8   : > { %s657_s20 = smov (%p30_p0, %s28_s20), 0  ;;  %p124_p5 = scmp.eq.s32.totalorder %s366_s19, 1 }
   0x9   : > { %p582_p4 = por %p118_p2, %p117_p1  ;;  %s102_s23 = ssub.s32 %s515_s16, %s657_s20 }
   0xa   : > { %p369_p6 = scmp.ge.s32.totalorder %s519_s17, 1  ;;  %p105_p7 = scmp.eq.s32.totalorder %s102_s23, 0 }
   0xb   : > { %p589_p8 = por %p124_p5, %p123_p3  ;;  %p161_p9 = scmp.lt.s32.totalorder %s519_s17, 3 }
   0xc   : > { %s595_s25 = scalar_select %p105_p7, %s507_s14, %s107_s21  }
   0xd   : > { %p162_p10 = pnand %p369_p6, %p161_p9 }
   0xe   : > { %p190_p11 = scmp.lt.s32.totalorder (!%p162_p10), %s511_s15, 1  ;;  %s186_s8 = sand.u32 (!%p162_p10), 1, %s503_s13  }
   0xf   : > { %165 = sbr.rel (%p162_p10) target bundleno = 169 (0xa9), region = 32  ;;  %s370_s9 = sshll.u32 (!%p162_p10), %s186_s8, 4 }
  0x10   : > { %s383_s10 = sshll.u32 (!%p162_p10), %s511_s15, 4  ;;  %s188_s21 = scalar_lea.vmem (!%p162_p10), [#allocation2], %s370_s9 }
  0x11   : > { %s284_s19 = scalar_lea.hbm (!%p162_p10), %s648_s3, %s383_s10  ;;  %s286_s23 = sshll.u32 (!%p162_p10), %s188_s21, 4  ;;  %s287_s23 = int_to_ptr.vmem [resolvable:$true] %s286_s23 }
  0x12   : > { %s288_s26 = sshll.u32 (!%p162_p10), %s284_s19, 4  ;;  %s461_s4 = scalar_lea.hbm (!%p162_p10), %s648_s3, 32  ;;  %s289_s26 = int_to_ptr.hbm [resolvable:$true] %s288_s26 }
  0x13   : > { %s455_s27 = sshra.s32 (!%p162_p10), %s289_s26, 4  ;;  %s456_s27 = int_to_ptr.hbm [resolvable:$true] %s455_s27 }
  0x14   : > { %v202_v0 = vld [vmem:[%s646_s1] sm:$0xff]  ;;  %v521_v1 = vmov 0   ;;  %s191_s28 = scalar_select %p190_p11, %s511_s15, 1  ;;  %vm216_vm0 = vcmask 1043456   ;;  %vm212_vm1 = vcmask 31744   ;;  %v261_v6 = vlaneseq }
  0x15   : > { %440 = vset.pattern.permute.xlu0 %v521_v1  ;;  %v201_v3 = vld [vmem:[%s645_s0] sm:$0xff]  ;;  %s271_s15 = scalar_lea.sflag [#allocation3], %s186_s8  ;;  %p462_p1 = scmp.lt.s32.totalorder %s456_s27, %s648_s3 }
  0x16   : > { %205 = vperm.xlu0 %440, %v202_v0   ;;  %s382_s29 = sshll.u32 %s191_s28, 3  ;;  %v262_v8 = vshrl.u32 %v261_v6, 7  ;;  %s457_s28 = scalar_lea.hbm %s456_s27, 16 }
  0x17   : > { %s197_s5 = scalar_lea.vmem %s647_s2, %s382_s29  ;;  %p458_p12 = scmp.ne.s32.totalorder %s456_s27, %s457_s28 }
  0x18   : > { %v200_v2 = vld [vmem:[%s197_s5] sm:$0xff]  ;;  %vm263_vm2 = vcmp.lt.s32.totalorder %v262_v8, 4  ;;  %p463_p2 = scmp.lt.s32.totalorder %s461_s4, %s457_s28 }
  0x19   : > { %209 = vst [vmem:[#allocation1] ss:$2 sm:$0xff] %v200_v2  ;;  %p459_p13 = pnand %p458_p12, %p582_p4 }
  0x1a   : > { %p464_p3 = por %p463_p2, %p462_p1 }
  0x1b   : > { %p460_p0 = pneg %p459_p13 }
  0x1d   : > { %p465_p5 = pnand %p464_p3, %p460_p0 }
  0x20   : > { %v210_v4 = vld.sshfl [vmem:[#allocation1] sm:$0xff pattern:$0x75316420]  ;;  %v211_v5 = vld.sshfl [vmem:[#allocation1 + $0x8] sm:$0xff pattern:$0x75316420] }
  0x21   : > { %373 = vmatpush.msk.msra.mxu0 %vm216_vm0, %v210_v4  ;;  %375 = vmatpush.msk.msra.mxu1 %vm216_vm0, %v211_v5 }
  0x22   : > { %374 = vmatmul.msk.f32.vlgmr.msra.gmra.mxu0 %vm212_vm1, %v201_v3  ;;  %376 = vmatmul.msk.f32.vlgmr.msra.gmra.mxu1 %vm212_vm1, %v201_v3 }
  0x88   : > { %v206_v7 = vpop.permute.xlu0 %205 }
  0x9f   : > { %v238_v9 = vpop.f32.mrf.mxu0  ;;  %v258_v10 = vpop.f32.mrf.mxu1 }
  0xa0   : > { %v239_v11 = vadd.f32 %v238_v9, %v206_v7  ;;  %v259_v12 = vadd.f32 %v258_v10, %v206_v7 }
  0xa2   : > { %v264_v13 = vmax.f32 %v239_v11, 0.0  ;;  %v265_v14 = vmax.f32 %v259_v12, 0.0 }
  0xa4   : > { %v266_v15 = vsel %vm263_vm2, %v264_v13, %v239_v11  ;;  %v267_v16 = vsel %vm263_vm2, %v265_v14, %v259_v12 }
  0xa5   : > { %268 = vst [vmem:[%s188_s21] sm:$0xff] %v266_v15 }
  0xa6   : > { %269 = vst [vmem:[%s188_s21 + $0x8] sm:$0xff] %v267_v16 }
  0xa7   : > { %468 = shalt.err (!%p465_p5)
}
  0xa8   : > { %384 = dma.vmem_to_hbm [thread:$0]  (%p582_p4), %s287_s23, 256, %s289_s26, %s271_s15  }
  0xa9 PF: > { %p390_p6 = scmp.ge.s32.totalorder %s519_s17, 2  ;;  %s300_s7 = sand.u32 1, %s499_s12  }
  0xaa   : > { %s301_s8 = scalar_lea.sflag [#allocation3], %s300_s7 }
  0xab   : > { %p387_p7 = pnand %p390_p6, %p589_p8 }
  0xad   : > { %p388_p9 = pneg %p387_p7 }
  0xaf   : > { %494 = dma.done.wait (%p388_p9), %s301_s8, 256  }
  0xb0   : > { %496 = vsyncadd (%p388_p9), %s301_s8, 4294967040  ;;  %s16_s17 = sadd.s32 1, %s519_s17   ;;  %s651_s12 = smov %s503_s13 }
  0xb1   : > { %p13_p10 = scmp.ge.s32.totalorder %s16_s17, 4   ;;  %s652_s13 = smov %s507_s14 }
  0xb2   : > { %s653_s14 = smov %s595_s25  ;;  %s654_s15 = smov %s515_s16 }
  0xb3   : > { %s655_s16 = smov %s657_s20  ;;  %15 = sbr.rel (!%p13_p10) target bundleno = 4 (0x4), region = 67 }
  0xb8   :  { %307 = vsyncpa [#allocation3], 1 }
  0xb9   :  { %309 = vsyncpa [#allocation3 + $0x1], 1 }

</bundles_post_ra>
